<compile_context>
chip_gen: v6e
topology: v6e:2x2x1
jax: 0.10.0
libtpu: 0.0.40
codegen_flags: <defaults>
</compile_context>

<pallas_src>
import functools

import jax
import jax.numpy as jnp
from jax.experimental import pallas as pl
from jax.experimental.pallas import tpu as pltpu

_LANE = 128


# ------------------------------- kernel body --------------------------------

def _copy_kernel(x_ref, o_ref):
    # Both refs have identical shapes; the shuffle itself is done by the
    # BlockSpec index maps (DMA addressing), so the body is a pure copy.
    o_ref[...] = x_ref[...]


# ------------------------------- small helpers -------------------------------

def _round_up(v, m):
    return ((v + m - 1) // m) * m


def _sublane(itemsize):
    # Sublane tile of the second-minor dim per dtype width.
    return {4: 8, 2: 16, 1: 32}.get(itemsize, 8)


def _divisors(n):
    ds = set()
    i = 1
    while i * i <= n:
        if n % i == 0:
            ds.add(i)
            ds.add(n // i)
        i += 1
    return sorted(ds)


def _vmem_budgets():
    """(per-block-per-ref byte budget, vmem_limit_bytes), generation aware."""
    try:
        cap = int(pltpu.get_tpu_info().vmem_capacity_bytes)
    except Exception:
        cap = 64 * 1024 * 1024  # be conservative: v7x has 64 MiB per TensorCore
    if cap >= 96 * 1024 * 1024:
        # v5e / v6e: 128 MiB physical -> large blocks amortize per-step overhead.
        return 8 * 1024 * 1024, 96 * 1024 * 1024
    # v7x (64 MiB / TC): in+out double-buffered = 4 blocks must fit comfortably.
    return 4 * 1024 * 1024, 48 * 1024 * 1024


def _build_grid(axis_sizes):
    """Drop size-1 axes and put the largest first (better megacore split)."""
    axes = [(name, size) for name, size in axis_sizes if size > 1]
    axes.sort(key=lambda t: -t[1])  # stable: ties keep original order
    names = tuple(n for n, _ in axes)
    grid = tuple(s for _, s in axes)
    return names, grid


# --------------------------- lane-dense primary path -------------------------

def _shuffle_lane_dense(x, g, budget, vmem_limit):
    """Requires (H*W) % 128 == 0. Blocks are lane-dense slabs of S = H*W."""
    N, C, H, W = x.shape
    cpg = C // g
    S = H * W
    itemsize = x.dtype.itemsize
    sub = _sublane(itemsize)

    def padded_bytes(nb, ct, st):
        # Physical VMEM footprint of one block of one ref (lane + sublane padding).
        return nb * _round_up(ct, sub) * _round_up(st, _LANE) * itemsize

    # --- pick block sizes ----------------------------------------------------
    nb, ct, st = N, cpg, S                      # fold N + full group if it fits
    if padded_bytes(nb, ct, st) > budget:
        nb = 1
    if padded_bytes(nb, ct, st) > budget:
        # Tile the channel axis, keeping the full spatial extent contiguous per
        # DMA run.  ct must be a sublane multiple (or all of cpg) to stay aligned.
        cand = [d for d in _divisors(cpg)
                if d % sub == 0 and padded_bytes(nb, d, S) <= budget]
        ct = max(cand) if cand else cpg
    if padded_bytes(nb, ct, st) > budget:
        # Last resort: tile S in multiples of 128 (keeps unmasked lane stores).
        cand = [d for d in _divisors(S)
                if d % _LANE == 0 and padded_bytes(nb, ct, d) <= budget]
        st = max(cand) if cand else _LANE

    cc, nn, sc = cpg // ct, N // nb, S // st
    names, grid = _build_grid((("c", cc), ("n", nn), ("g", g), ("s", sc)))
    s_blocks = S // st

    def in_index(*idx):
        d = dict(zip(names, idx))
        return (d.get("n", 0), d.get("g", 0), d.get("c", 0), d.get("s", 0))

    def out_index(*idx):
        d = dict(zip(names, idx))
        return (d.get("n", 0), d.get("c", 0), d.get("g", 0) * s_blocks + d.get("s", 0))

    # Free view: split the channel axis into (g, cpg) and flatten H*W.
    xv = x.reshape(N, g, cpg, S)

    # Input block : x[nb-chunk, gi, ct-chunk, st-chunk]      -> (nb, ct, st)
    in_spec = pl.BlockSpec((nb, None, ct, st), in_index)
    # Output block: out[nb-chunk, ct-chunk, gi*S + st-chunk] -> (nb, ct, st)
    # Output layout (N, cpg, g*S) flattens to channel order k*g + gi for free.
    out_spec = pl.BlockSpec((nb, ct, st), out_index)

    out = pl.pallas_call(
        _copy_kernel,
        out_shape=jax.ShapeDtypeStruct((N, cpg, g * S), x.dtype),
        grid=grid,
        in_specs=[in_spec],
        out_specs=out_spec,
        compiler_params=pltpu.CompilerParams(
            dimension_semantics=("parallel",) * len(grid),
            vmem_limit_bytes=vmem_limit,
        ),
    )(xv)
    return out.reshape(N, C, H, W)


# -------------------------- fallback path (odd H*W) ---------------------------

def _shuffle_nchw_blocks(x, g, budget, vmem_limit):
    """Fallback when H*W is not a multiple of 128: trailing (H, W) blocks."""
    N, C, H, W = x.shape
    cpg = C // g
    itemsize = x.dtype.itemsize
    sub = _sublane(itemsize)

    def padded_bytes(nb, ct):
        return nb * ct * _round_up(H, sub) * _round_up(W, _LANE) * itemsize

    nb, ct = N, cpg
    if padded_bytes(nb, ct) > budget:
        nb = 1
    if padded_bytes(nb, ct) > budget:
        cand = [d for d in _divisors(cpg) if padded_bytes(nb, d) <= budget]
        ct = max(cand) if cand else 1
        # TODO(synk): also tile H if a single (H, W) plane ever exceeds the budget.

    cc, nn = cpg // ct, N // nb
    names, grid = _build_grid((("c", cc), ("n", nn), ("g", g)))

    def in_index(*idx):
        d = dict(zip(names, idx))
        return (d.get("n", 0), d.get("g", 0), d.get("c", 0), 0, 0)

    def out_index(*idx):
        d = dict(zip(names, idx))
        return (d.get("n", 0), d.get("c", 0), d.get("g", 0), 0, 0)

    xv = x.reshape(N, g, cpg, H, W)
    in_spec = pl.BlockSpec((nb, None, ct, H, W), in_index)
    out_spec = pl.BlockSpec((nb, ct, None, H, W), out_index)

    out = pl.pallas_call(
        _copy_kernel,
        out_shape=jax.ShapeDtypeStruct((N, cpg, g, H, W), x.dtype),
        grid=grid,
        in_specs=[in_spec],
        out_specs=out_spec,
        compiler_params=pltpu.CompilerParams(
            dimension_semantics=("parallel",) * len(grid),
            vmem_limit_bytes=vmem_limit,
        ),
    )(xv)
    return out.reshape(N, C, H, W)


# ------------------------------ public wrapper -------------------------------

@functools.partial(jax.jit, static_argnames=("num_groups",))
def channel_shuffle(x, num_groups):
    """Channel shuffle on an NCHW tensor, identical to the PyTorch Shuffle module."""
    N, C, H, W = x.shape
    g = int(num_groups)
    if C % g != 0:
        raise ValueError("channels must be divisible by num_groups")
    if g == 1:
        return x  # identity

    budget, vmem_limit = _vmem_budgets()
    if (H * W) % _LANE == 0:
        return _shuffle_lane_dense(x, g, budget, vmem_limit)
    return _shuffle_nchw_blocks(x, g, budget, vmem_limit)


# ------------------------------ reference impl -------------------------------

def channel_shuffle_ref(x, num_groups):
    n, c, h, w = x.shape
    return (x.reshape(n, num_groups, c // num_groups, h, w)
              .transpose(0, 2, 1, 3, 4)
              .reshape(n, c, h, w))


# ----------------------------------- main ------------------------------------

if __name__ == "__main__":
    key = jax.random.PRNGKey(0)
    k1, k2 = jax.random.split(key)

    # Small shape consistent with the module spec.
    x1 = jax.random.normal(k1, (2, 4, 16, 16), jnp.float32)
    y1 = jax.block_until_ready(channel_shuffle(x1, num_groups=2))
    assert y1.shape == x1.shape, y1.shape
    assert bool(jnp.array_equal(y1, channel_shuffle_ref(x1, 2))), "mismatch (2,4,16,16) g=2"

    # ShuffleNet-style channel count (groups=3), still small spatially.
    x2 = jax.random.normal(k2, (2, 240, 16, 16), jnp.float32)
    y2 = jax.block_until_ready(channel_shuffle(x2, num_groups=3))
    assert y2.shape == x2.shape, y2.shape
    assert bool(jnp.array_equal(y2, channel_shuffle_ref(x2, 3))), "mismatch (2,240,16,16) g=3"

    assert bool(jnp.all(jnp.isfinite(y1))) and bool(jnp.all(jnp.isfinite(y2)))
    print("KERNEL_OK")
</pallas_src>

<mosaic_0001>
module attributes {stable_mosaic.version = 11 : i64} {
  func.func @_copy_kernel(%arg0: i32, %arg1: memref<2x1x2x256xf32, #tpu.memory_space<vmem>>, %arg2: memref<2x2x256xf32, #tpu.memory_space<vmem>>) attributes {dimension_semantics = [#tpu.dimension_semantics<parallel>], iteration_bounds = array<i64: 2>, scalar_prefetch = 0 : i64, scratch_operands = 0 : i64, tpu.core_type = #tpu.core_type<tc>, window_params = [{transform_indices = @transform_0, window_bounds = array<i64: 2, 1, 2, 256>}, {transform_indices = @transform_1, window_bounds = array<i64: 2, 2, 256>}]} {
    %c0 = arith.constant 0 : index
    %c0_0 = arith.constant 0 : index
    %c0_1 = arith.constant 0 : index
    %c0_2 = arith.constant 0 : index
    %0 = vector.load %arg1[%c0, %c0_0, %c0_1, %c0_2] : memref<2x1x2x256xf32, #tpu.memory_space<vmem>>, vector<2x1x2x256xf32>
    %1 = vector.shape_cast %0 : vector<2x1x2x256xf32> to vector<2x2x256xf32>
    %c0_3 = arith.constant 0 : index
    %c0_4 = arith.constant 0 : index
    %c0_5 = arith.constant 0 : index
    %2 = vector.load %arg2[%c0_3, %c0_4, %c0_5] : memref<2x2x256xf32, #tpu.memory_space<vmem>>, vector<2x2x256xf32>
    tpu.vector_store %arg2[%c0_3, %c0_4, %c0_5], %1 {strides = array<i32>} : memref<2x2x256xf32, #tpu.memory_space<vmem>>, vector<2x2x256xf32>,
    return
  }
  func.func @transform_0(%arg0: i32) -> (i32, i32, i32, i32) {
    %c0_i32 = arith.constant 0 : i32
    %c0_i32_0 = arith.constant 0 : i32
    %c0_i32_1 = arith.constant 0 : i32
    %c0_i32_2 = arith.constant 0 : i32
    return %c0_i32, %arg0, %c0_i32_0, %c0_i32_1 : i32, i32, i32, i32
  }
  func.func @transform_1(%arg0: i32) -> (i32, i32, i32) {
    %c1_i32 = arith.constant 1 : i32
    %0 = arith.muli %arg0, %c1_i32 : i32
    %c0_i32 = arith.constant 0 : i32
    %1 = arith.addi %0, %c0_i32 : i32
    %c0_i32_0 = arith.constant 0 : i32
    %c0_i32_1 = arith.constant 0 : i32
    %c0_i32_2 = arith.constant 0 : i32
    return %c0_i32_0, %c0_i32_1, %1 : i32, i32, i32
  }
}

</mosaic_0001>

<bundles_post_ra>
// kernel: channel_shuffle.1
= control target key start
LH: loop header
LB: loop body
LE: loop exit
PB: predicated region body
PF: predicated region fallthrough
CT: control target
= control target key end

     0   :  { %s350_s6 = smov 0   ;;  %s352_s7 = smov 0   ;;  %s410_s0 = inlined_call_operand.vmem [shape: f32[2,2,2,256], index: 0, kind: input, shape index: {}]   ;;  %s411_s1 = inlined_call_operand.vmem [shape: f32[2,2,512], index: 1, kind: output, shape index: {}]  }
   0x1   :  { %s354_s8 = smov 0  }
   0x2 LB: > { %s275_s9 = sadd.s32 4294967295, %s338_s8   ;;  %s367_s10 = sadd.s32 1, %s338_s8   ;;  %s338_s8 = sphi %s354_s8, %s415_s8   ;;  %s334_s7 = sphi %s352_s7, %s414_s7   ;;  %s330_s6 = sphi %s350_s6, %s413_s6  }
   0x3   : > { %s15_s11 = ssub.s32 %s338_s8, %s367_s10  ;;  %s18_s12 = sadd.s32 1, %s334_s7 }
   0x4   : > { %p16_p0 = scmp.eq.s32.totalorder %s15_s11, 0  ;;  %p25_p1 = scmp.ne.s32.totalorder %s334_s7, %s330_s6 }
   0x5   : > { %p26_p2 = scmp.eq.s32.totalorder %s338_s8, 0  ;;  %p55_p3 = scmp.eq.s32.totalorder %s275_s9, 1 }
   0x6   : > { %s378_s13 = scalar_select %p16_p0, %s334_s7, %s18_s12  }
   0x7   : > { %p27_p4 = por %p26_p2, %p25_p1  ;;  %p380_p5 = por %p55_p3, %p25_p1 }
   0x8   : > { %p278_p6 = scmp.ge.s32.totalorder %s338_s8, 2 }
   0xa   : > { %77 = sbr.rel (%p278_p6) target bundleno = 20 (0x14), region = 16 }
   0xf   : > { %80 = sbr.rel (!%p27_p4) target bundleno = 20 (0x14), region = 20  ;;  %s82_s15 = sand.u32 (%p27_p4), 1, %s334_s7  }
  0x10   : > { %s290_s16 = sshll.u32 (%p27_p4), %s338_s8, 2  ;;  %s279_s17 = sshll.u32 (%p27_p4), %s82_s15, 3 }
  0x11   : > { %s87_s20 = scalar_lea.vmem (%p27_p4), %s410_s0, %s290_s16  ;;  %s84_s21 = scalar_lea.vmem (%p27_p4), [#allocation2], %s279_s17 }
  0x12   : > { %v104_v0 = vld [vmem:[%s87_s20] sm:$0xf] (%p27_p4)  ;;  %v106_v1 = vld [vmem:[%s87_s20 + $0x8] sm:$0xf] (%p27_p4) }
  0x13   : > { %105 = vst [vmem:[%s84_s21] sm:$0xf] (%p27_p4), %v104_v0  ;;  %107 = vst [vmem:[%s84_s21 + $0x4] sm:$0xf] (%p27_p4), %v106_v1 }
  0x14 PF: > { %p282_p7 = scmp.ge.s32.totalorder %s338_s8, 1  ;;  %p134_p8 = scmp.lt.s32.totalorder %s338_s8, 3 }
  0x16   : > { %p135_p9 = pnand %p282_p7, %p134_p8 }
  0x17   : > { %s141_s22 = sand.u32 (!%p135_p9), 1, %s330_s6  }
  0x18   : > { %138 = sbr.rel (%p135_p9) target bundleno = 39 (0x27), region = 61  ;;  %s283_s23 = sshll.u32 (!%p135_p9), %s141_s22, 3 }
  0x19   : > { %s143_s24 = scalar_lea.vmem (!%p135_p9), [#allocation2], %s283_s23  ;;  %s158_s25 = scalar_lea.vmem (!%p135_p9), [#allocation3], %s283_s23 }
  0x1d   : > { %v160_v2 = vld [vmem:[%s143_s24] sm:$0xff]   ;;  %170 = sbr.rel (!%p380_p5) target bundleno = 39 (0x27), region = 69  ;;  %s291_s26 = sshll.u32 (%p380_p5), %s275_s9, 2 }
  0x1e   : > { %162 = vst [vmem:[%s158_s25] sm:$0xff] %v160_v2   ;;  %s173_s29 = scalar_lea.vmem (%p380_p5), %s411_s1, %s291_s26 }
  0x25   : > { %v190_v3 = vld [vmem:[%s158_s25] sm:$0xf]  ;;  %v192_v4 = vld [vmem:[%s158_s25 + $0x4] sm:$0xf] }
  0x26   : > { %191 = vst [vmem:[%s173_s29] sm:$0xf] %v190_v3  ;;  %193 = vst [vmem:[%s173_s29 + $0x8] sm:$0xf] %v192_v4 }
  0x27 PF: > { %p8_p10 = scmp.ge.s32.totalorder %s367_s10, 4   ;;  %s413_s6 = smov %s334_s7 }
  0x28   : > { %s414_s7 = smov %s378_s13  ;;  %s415_s8 = smov %s367_s10 }
  0x29   :  { %10 = sbr.rel (!%p8_p10) target bundleno = 2 (0x2), region = 141 }

</bundles_post_ra>
